<compile_context>
chip_gen: v6e
topology: v6e:2x2x1
jax: 0.10.0
libtpu: 0.0.40
codegen_flags: <defaults>
</compile_context>

<pallas_src>
import functools

import jax
import jax.numpy as jnp
from jax.experimental import pallas as pl
from jax.experimental.pallas import tpu as pltpu


def _mod8pt_kernel(*refs, beta, logspace, n_total, tile_n, has_weight):
    """One tile of proposals.

    refs: x_ref (8, tile_n), t_ref (8, tile_n), [w_ref (1, tile_n)], out_ref (1, tile_n)
    out_ref receives the per-proposal modulated loss (weighted), zero on
    out-of-range lanes; the wrapper sums it.
    """
    if has_weight:
        x_ref, t_ref, w_ref, out_ref = refs
    else:
        x_ref, t_ref, out_ref = refs

    x = x_ref[...]          # (8, tile_n)
    t = t_ref[...]          # (8, tile_n)

    l1_only = beta < 1e-5
    half_beta = 0.5 * beta
    inv_2beta = 0.0 if l1_only else 0.5 / beta   # hoisted: no per-element divide

    def smooth_l1(a):
        d = jnp.abs(a - t)
        if l1_only:
            return d
        return jnp.where(d < beta, d * d * inv_2beta, d - half_beta)

    def per_box(a):
        l = smooth_l1(a)
        if logspace:
            l = jnp.log1p(l)
        return jnp.sum(l, axis=0, keepdims=True)   # (1, tile_n)

    # Cyclic rotation of the 4 (x, y) points == roll of the 8 coords by +-2
    # along the sublane axis.  min(rot_a, rot_b) is invariant to which of the
    # two rotations each roll produces.
    x1 = pltpu.roll(x, shift=2, axis=0)
    x2 = pltpu.roll(x, shift=6, axis=0)

    losses = jnp.minimum(jnp.minimum(per_box(x), per_box(x1)), per_box(x2))
    if has_weight:
        losses = losses * w_ref[...]

    if n_total % tile_n != 0:
        # Ragged last tile: zero out lanes beyond n_total (their input data is
        # unspecified since we do not pad on the host).
        i = pl.program_id(0)
        lane = jax.lax.broadcasted_iota(jnp.int32, losses.shape, 1)
        valid = (i * tile_n + lane) < n_total
        losses = jnp.where(valid, losses, 0.0)

    out_ref[...] = losses


def modulated_eight_point_loss(inputs, targets, weight=None, *,
                               beta=1.0 / 9, reduction='sum', logspace=True,
                               tile_n=8192):
    """JAX/Pallas equivalent of ModulatedEightPointLoss.forward."""
    if reduction not in ('sum', 'mean'):
        # TODO(synk): reduction='none' returns a per-coordinate loss matrix
        # (elementwise min, no row reduction); only the scalar reductions
        # ('sum' / 'mean', module default is 'sum') are kernelized.
        raise NotImplementedError(reduction)

    n = inputs.shape[0]
    assert inputs.shape == (n, 8) and targets.shape == (n, 8)

    # Clamp the tile to the (lane-rounded) problem size and keep it a multiple
    # of 128.  No host-side padding: the ragged tail is masked in-kernel.
    tile_n = max(128, min(int(tile_n), pl.cdiv(n, 128) * 128))
    tile_n = pl.cdiv(tile_n, 128) * 128
    grid_n = pl.cdiv(n, tile_n)
    n_out = grid_n * tile_n

    # TODO(synk): if the producer can emit the coords as (8, n) directly, drop
    # this transpose — it is the only remaining extra full pass over the data.
    x_t = inputs.astype(jnp.float32).T     # (8, n)
    t_t = targets.astype(jnp.float32).T    # (8, n)

    has_weight = weight is not None
    args = [x_t, t_t]
    in_specs = [
        pl.BlockSpec((8, tile_n), lambda i: (0, i)),
        pl.BlockSpec((8, tile_n), lambda i: (0, i)),
    ]
    if has_weight:
        w = weight.astype(jnp.float32)
        # forward() only multiplies by weight when weight.sum() > 0; fold the
        # data-dependent flag into an effective weight of ones on the host.
        w_eff = jnp.where(jnp.sum(w) > 0, w, jnp.ones_like(w)).reshape(1, n)
        args.append(w_eff)
        in_specs.append(pl.BlockSpec((1, tile_n), lambda i: (0, i)))

    kernel = functools.partial(_mod8pt_kernel, beta=beta, logspace=logspace,
                               n_total=n, tile_n=tile_n, has_weight=has_weight)

    per_prop = pl.pallas_call(
        kernel,
        out_shape=jax.ShapeDtypeStruct((1, n_out), jnp.float32),
        grid_spec=pltpu.PrefetchScalarGridSpec(
            num_scalar_prefetch=0,
            grid=(grid_n,),
            in_specs=in_specs,
            out_specs=pl.BlockSpec((1, tile_n), lambda i: (0, i)),
        ),
        compiler_params=pltpu.CompilerParams(
            dimension_semantics=("parallel",)),
    )(*args)

    total = jnp.sum(per_prop)
    if reduction == 'mean':
        # per-box mean over 8 coords, then mean over boxes.
        return total / (8.0 * n)
    return total


def _reference(inputs, targets, weight=None, *,
               beta=1.0 / 9, reduction='sum', logspace=True):
    """Pure-JAX reference mirroring the PyTorch module."""
    def sl1(a, b):
        nrm = jnp.abs(a - b)
        if beta < 1e-5:
            return nrm
        return jnp.where(nrm < beta, 0.5 * nrm * nrm / beta, nrm - 0.5 * beta)

    n = inputs.shape[0]
    l0 = sl1(inputs, targets)
    v = inputs.reshape(n, 4, 2)
    i1 = v[:, jnp.array([1, 2, 3, 0])].reshape(n, -1)
    i2 = v[:, jnp.array([3, 0, 1, 2])].reshape(n, -1)
    l1 = sl1(i1, targets)
    l2 = sl1(i2, targets)
    if logspace:
        l0, l1, l2 = jnp.log1p(l0), jnp.log1p(l1), jnp.log1p(l2)
    if reduction == 'mean':
        l0, l1, l2 = l0.mean(1), l1.mean(1), l2.mean(1)
    elif reduction == 'sum':
        l0, l1, l2 = l0.sum(1), l1.sum(1), l2.sum(1)
    losses = jnp.min(jnp.stack([l0, l1, l2], axis=-1), axis=-1)
    if weight is not None:
        losses = jnp.where(jnp.sum(weight) > 0, losses * weight, losses)
    if reduction == 'mean':
        return losses.mean()
    if reduction == 'sum':
        return losses.sum()
    return losses


if __name__ == "__main__":
    key = jax.random.PRNGKey(0)

    # (n, tile_n, reduction): single ragged tile, multi-tile ragged, mean.
    cases = [(16, 8192, 'sum'), (300, 128, 'sum'), (300, 128, 'mean')]
    for n, tile_n, reduction in cases:
        k1, k2, k3 = jax.random.split(jax.random.fold_in(key, n + tile_n), 3)
        inputs = jax.random.normal(k1, (n, 8), dtype=jnp.float32)
        targets = jax.random.normal(k2, (n, 8), dtype=jnp.float32)
        weight = jax.random.uniform(k3, (n,), dtype=jnp.float32)

        out_w = jax.block_until_ready(
            modulated_eight_point_loss(inputs, targets, weight,
                                       reduction=reduction, tile_n=tile_n))
        ref_w = _reference(inputs, targets, weight, reduction=reduction)
        assert jnp.allclose(out_w, ref_w, rtol=1e-5, atol=1e-5), \
            (n, reduction, out_w, ref_w)

        out_nw = jax.block_until_ready(
            modulated_eight_point_loss(inputs, targets, None,
                                       reduction=reduction, tile_n=tile_n))
        ref_nw = _reference(inputs, targets, None, reduction=reduction)
        assert jnp.allclose(out_nw, ref_nw, rtol=1e-5, atol=1e-5), \
            (n, reduction, out_nw, ref_nw)

    # all-zero weight -> module skips the weighting (weight.sum() > 0 is False).
    k1, k2, _ = jax.random.split(key, 3)
    n = 64
    inputs = jax.random.normal(k1, (n, 8), dtype=jnp.float32)
    targets = jax.random.normal(k2, (n, 8), dtype=jnp.float32)
    wz = jnp.zeros((n,), jnp.float32)
    out_z = jax.block_until_ready(modulated_eight_point_loss(inputs, targets, wz))
    ref_z = _reference(inputs, targets, wz)
    assert jnp.allclose(out_z, ref_z, rtol=1e-5, atol=1e-5), (out_z, ref_z)

    print("KERNEL_OK")
</pallas_src>

<mosaic_0001>
module attributes {stable_mosaic.version = 11 : i64} {
  func.func @_mod8pt_kernel(%arg0: i32, %arg1: memref<8x128xf32, #tpu.memory_space<vmem>>, %arg2: memref<8x128xf32, #tpu.memory_space<vmem>>, %arg3: memref<1x128xf32, #tpu.memory_space<vmem>>, %arg4: memref<1x128xf32, #tpu.memory_space<vmem>>) attributes {dimension_semantics = [#tpu.dimension_semantics<parallel>], iteration_bounds = array<i64: 1>, scalar_prefetch = 0 : i64, scratch_operands = 0 : i64, tpu.core_type = #tpu.core_type<tc>, window_params = [{transform_indices = @transform_0, window_bounds = array<i64: 8, 128>}, {transform_indices = @transform_1, window_bounds = array<i64: 8, 128>}, {transform_indices = @transform_2, window_bounds = array<i64: 1, 128>}, {transform_indices = @transform_3, window_bounds = array<i64: 1, 128>}]} {
    %c0 = arith.constant 0 : index
    %c0_0 = arith.constant 0 : index
    %0 = vector.load %arg1[%c0, %c0_0] : memref<8x128xf32, #tpu.memory_space<vmem>>, vector<8x128xf32>
    %c0_1 = arith.constant 0 : index
    %c0_2 = arith.constant 0 : index
    %1 = vector.load %arg2[%c0_1, %c0_2] : memref<8x128xf32, #tpu.memory_space<vmem>>, vector<8x128xf32>
    %c2_i32 = arith.constant 2 : i32
    %2 = tpu.dynamic_rotate %0 by %c2_i32 dim 0 : vector<8x128xf32>, i32 -> vector<8x128xf32>
    %c6_i32 = arith.constant 6 : i32
    %3 = tpu.dynamic_rotate %0 by %c6_i32 dim 0 : vector<8x128xf32>, i32 -> vector<8x128xf32>
    %4 = arith.subf %0, %1 : vector<8x128xf32>
    %5 = math.absf %4 : vector<8x128xf32>
    %cst = arith.constant 0.111111112 : f32
    %6 = vector.broadcast %cst : f32 to vector<8x128xf32>
    %7 = arith.cmpf olt, %5, %6 : vector<8x128xf32>
    %8 = arith.mulf %5, %5 : vector<8x128xf32>
    %cst_3 = arith.constant 4.500000e+00 : f32
    %9 = vector.broadcast %cst_3 : f32 to vector<8x128xf32>
    %10 = arith.mulf %8, %9 : vector<8x128xf32>
    %cst_4 = arith.constant 0.055555556 : f32
    %11 = vector.broadcast %cst_4 : f32 to vector<8x128xf32>
    %12 = arith.subf %5, %11 : vector<8x128xf32>
    %13 = arith.select %7, %10, %12 : vector<8x128xi1>, vector<8x128xf32>
    %14 = math.log1p %13 : vector<8x128xf32>
    %cst_5 = arith.constant dense<0.000000e+00> : vector<128xf32>
    %15 = vector.multi_reduction <add>, %14, %cst_5 [0] : vector<8x128xf32> to vector<128xf32>
    %16 = vector.shape_cast %15 : vector<128xf32> to vector<1x128xf32>
    %17 = arith.subf %2, %1 : vector<8x128xf32>
    %18 = math.absf %17 : vector<8x128xf32>
    %cst_6 = arith.constant 0.111111112 : f32
    %19 = vector.broadcast %cst_6 : f32 to vector<8x128xf32>
    %20 = arith.cmpf olt, %18, %19 : vector<8x128xf32>
    %21 = arith.mulf %18, %18 : vector<8x128xf32>
    %cst_7 = arith.constant 4.500000e+00 : f32
    %22 = vector.broadcast %cst_7 : f32 to vector<8x128xf32>
    %23 = arith.mulf %21, %22 : vector<8x128xf32>
    %cst_8 = arith.constant 0.055555556 : f32
    %24 = vector.broadcast %cst_8 : f32 to vector<8x128xf32>
    %25 = arith.subf %18, %24 : vector<8x128xf32>
    %26 = arith.select %20, %23, %25 : vector<8x128xi1>, vector<8x128xf32>
    %27 = math.log1p %26 : vector<8x128xf32>
    %cst_9 = arith.constant dense<0.000000e+00> : vector<128xf32>
    %28 = vector.multi_reduction <add>, %27, %cst_9 [0] : vector<8x128xf32> to vector<128xf32>
    %29 = vector.shape_cast %28 : vector<128xf32> to vector<1x128xf32>
    %30 = arith.minimumf %16, %29 : vector<1x128xf32>
    %31 = arith.subf %3, %1 : vector<8x128xf32>
    %32 = math.absf %31 : vector<8x128xf32>
    %cst_10 = arith.constant 0.111111112 : f32
    %33 = vector.broadcast %cst_10 : f32 to vector<8x128xf32>
    %34 = arith.cmpf olt, %32, %33 : vector<8x128xf32>
    %35 = arith.mulf %32, %32 : vector<8x128xf32>
    %cst_11 = arith.constant 4.500000e+00 : f32
    %36 = vector.broadcast %cst_11 : f32 to vector<8x128xf32>
    %37 = arith.mulf %35, %36 : vector<8x128xf32>
    %cst_12 = arith.constant 0.055555556 : f32
    %38 = vector.broadcast %cst_12 : f32 to vector<8x128xf32>
    %39 = arith.subf %32, %38 : vector<8x128xf32>
    %40 = arith.select %34, %37, %39 : vector<8x128xi1>, vector<8x128xf32>
    %41 = math.log1p %40 : vector<8x128xf32>
    %cst_13 = arith.constant dense<0.000000e+00> : vector<128xf32>
    %42 = vector.multi_reduction <add>, %41, %cst_13 [0] : vector<8x128xf32> to vector<128xf32>
    %43 = vector.shape_cast %42 : vector<128xf32> to vector<1x128xf32>
    %44 = arith.minimumf %30, %43 : vector<1x128xf32>
    %c0_14 = arith.constant 0 : index
    %c0_15 = arith.constant 0 : index
    %45 = vector.load %arg3[%c0_14, %c0_15] : memref<1x128xf32, #tpu.memory_space<vmem>>, vector<1x128xf32>
    %46 = arith.mulf %44, %45 : vector<1x128xf32>
    %47 = tpu.iota {dimensions = array<i32: 1>} : vector<1x128xi32>
    %c128_i32 = arith.constant 128 : i32
    %48 = arith.muli %arg0, %c128_i32 : i32
    %49 = vector.broadcast %48 : i32 to vector<1x128xi32>
    %50 = arith.addi %49, %47 : vector<1x128xi32>
    %c16_i32 = arith.constant 16 : i32
    %51 = vector.broadcast %c16_i32 : i32 to vector<1x128xi32>
    %52 = arith.cmpi slt, %50, %51 : vector<1x128xi32>
    %cst_16 = arith.constant 0.000000e+00 : f32
    %53 = vector.broadcast %cst_16 : f32 to vector<1x128xf32>
    %54 = arith.select %52, %46, %53 : vector<1x128xi1>, vector<1x128xf32>
    %c0_17 = arith.constant 0 : index
    %c0_18 = arith.constant 0 : index
    %55 = vector.load %arg4[%c0_17, %c0_18] : memref<1x128xf32, #tpu.memory_space<vmem>>, vector<1x128xf32>
    tpu.vector_store %arg4[%c0_17, %c0_18], %54 {strides = array<i32>} : memref<1x128xf32, #tpu.memory_space<vmem>>, vector<1x128xf32>,
    return
  }
  func.func @transform_0(%arg0: i32) -> (i32, i32) {
    %c0_i32 = arith.constant 0 : i32
    %c0_i32_0 = arith.constant 0 : i32
    return %c0_i32, %arg0 : i32, i32
  }
  func.func @transform_1(%arg0: i32) -> (i32, i32) {
    %c0_i32 = arith.constant 0 : i32
    %c0_i32_0 = arith.constant 0 : i32
    return %c0_i32, %arg0 : i32, i32
  }
  func.func @transform_2(%arg0: i32) -> (i32, i32) {
    %c0_i32 = arith.constant 0 : i32
    %c0_i32_0 = arith.constant 0 : i32
    return %c0_i32, %arg0 : i32, i32
  }
  func.func @transform_3(%arg0: i32) -> (i32, i32) {
    %c0_i32 = arith.constant 0 : i32
    %c0_i32_0 = arith.constant 0 : i32
    return %c0_i32, %arg0 : i32, i32
  }
}

</mosaic_0001>

<bundles_post_ra>
// kernel: tpu_custom_call.1
= control target key start
LH: loop header
LB: loop body
LE: loop exit
PB: predicated region body
PF: predicated region fallthrough
CT: control target
= control target key end

     0   :  { %8 = vsyncpa [#allocation3], 0  ;;  %s250_s0 = inlined_call_operand.hbm [shape: f32[8,16], index: 0, kind: input, shape index: {}]   ;;  %s251_s1 = inlined_call_operand.hbm [shape: f32[8,16], index: 1, kind: input, shape index: {}]   ;;  %s252_s2 = inlined_call_operand.vmem [shape: f32[1,16], index: 2, kind: input, shape index: {}]   ;;  %s253_s3 = inlined_call_operand.hbm [shape: f32[1,128], index: 3, kind: output, shape index: {}]  }
   0x1   :  { %9 = vsyncpa [#allocation6], 0 }
   0x2   :  { %10 = vsyncpa [#allocation4], 0  ;;  %s215_s12 = smov [#allocation2]   ;;  %s216_s14 = smov [#allocation5]  }
   0x3   :  { %s17_s13 = sshll.u32 %s215_s12, 4  ;;  %s27_s15 = sshll.u32 %s216_s14, 4  ;;  %s18_s13 = int_to_ptr.vmem [resolvable:$true] %s17_s13  ;;  %s28_s15 = int_to_ptr.vmem [resolvable:$true] %s27_s15 }
   0x4   :  { %s157_s16 = scalar_lea.vmem %s18_s13, 128  ;;  %p162_p1 = scmp.lt.s32.totalorder %s18_s13, %s18_s13 }
   0x5   :  { %p158_p0 = scmp.ne.s32.totalorder %s18_s13, %s157_s16  ;;  %p163_p2 = scmp.lt.s32.totalorder %s157_s16, %s157_s16 }
   0x7   :  { %p164_p3 = por %p163_p2, %p162_p1 }
   0x9   :  { %p165_p4 = pnand %p164_p3, %p158_p0 }
   0xb   :  { %168 = shalt.err (!%p165_p4)
}
   0xc   :  { %20 = dma.hbm_to_vmem [thread:$0]  %s250_s0, 128, %s18_s13, [#allocation3]  }
   0xd   :  { %s177_s19 = scalar_lea.vmem %s28_s15, 128  ;;  %p182_p6 = scmp.lt.s32.totalorder %s28_s15, %s28_s15 }
   0xe   :  { %p178_p5 = scmp.ne.s32.totalorder %s28_s15, %s177_s19  ;;  %p183_p7 = scmp.lt.s32.totalorder %s177_s19, %s177_s19 }
  0x10   :  { %p184_p8 = por %p183_p7, %p182_p6 }
  0x12   :  { %p185_p9 = pnand %p184_p8, %p178_p5 }
  0x14   :  { %188 = shalt.err (!%p185_p9)
}
  0x15   :  { %30 = dma.hbm_to_vmem [thread:$0]  %s251_s1, 128, %s28_s15, [#allocation6]  }
  0x16   :  { %209 = dma.done.wait [#allocation3], 128  }
  0x17   :  { %210 = vsyncadd [#allocation3], 4294967168 }
  0x18   :  { %211 = dma.done.wait [#allocation6], 128  }
  0x19   :  { %212 = vsyncadd [#allocation6], 4294967168  ;;  %v39_v0 = vld [vmem:[#allocation2] sm:$0xff]  ;;  %v40_v1 = vld [vmem:[#allocation5] sm:$0xff]  ;;  %v113_v58 = vlaneseq  ;;  %s217_s22 = smov [#allocation7]  }
  0x1a   :  { %v41_v2 = vrot.slane %v39_v0, 6  ;;  %v42_v3 = vrot.slane %v39_v0, 2  ;;  %v43_v4 = vsub.f32 %v39_v0, %v40_v1  ;;  %s127_s23 = sshll.u32 %s217_s22, 4  ;;  %s128_s23 = int_to_ptr.vmem [resolvable:$true] %s127_s23 }
  0x1b   :  { %v114_v0 = vand.u32 127, %v113_v58  ;;  %s189_s24 = scalar_lea.vmem %s128_s23, 16  ;;  %s193_s25 = scalar_lea.vmem %s128_s23, 32 }
  0x1c   :  { %v44_v5 = vand.u32 2147483647, %v43_v4  ;;  %v65_v6 = vsub.f32 %v41_v2, %v40_v1  ;;  %v88_v7 = vsub.f32 %v42_v3, %v40_v1  ;;  %v111_v3 = vld [vmem:[%s252_s2] sm:$0x1]  ;;  %p190_p10 = scmp.ne.s32.totalorder %s128_s23, %s189_s24  ;;  %p194_p11 = scmp.lt.s32.totalorder %s128_s23, %s128_s23 }
  0x1d   :  { %vm118_vm6 = vcmp.lt.s32.totalorder %v114_v0, 16  ;;  %p195_p12 = scmp.lt.s32.totalorder %s193_s25, %s189_s24 }
  0x1e   :  { %v46_v8 = vmul.f32 %v44_v5, %v44_v5  ;;  %v137_v9 = vadd.f32 -0.055555556, %v44_v5  ;;  %v66_v10 = vand.u32 2147483647, %v65_v6  ;;  %vm45_vm0 = vcmp.lt.f32.partialorder %v44_v5, 0.11111111 }
  0x1f   :  { %v89_v11 = vand.u32 2147483647, %v88_v7  ;;  %p196_p13 = por %p195_p12, %p194_p11 }
  0x20   :  { %v47_v12 = vmul.f32 4.5, %v46_v8  ;;  %v68_v13 = vmul.f32 %v66_v10, %v66_v10  ;;  %v138_v14 = vadd.f32 -0.055555556, %v66_v10  ;;  %vm67_vm1 = vcmp.lt.f32.partialorder %v66_v10, 0.11111111 }
  0x21   :  { %v91_v15 = vmul.f32 %v89_v11, %v89_v11  ;;  %v139_v18 = vadd.f32 -0.055555556, %v89_v11  ;;  %vm90_vm2 = vcmp.lt.f32.partialorder %v89_v11, 0.11111111  ;;  %p197_p0 = pnand %p196_p13, %p190_p10 }
  0x22   :  { %v49_v16 = vsel %vm45_vm0, %v47_v12, %v137_v9  ;;  %v69_v17 = vmul.f32 4.5, %v68_v13 }
  0x23   :  { %v50_v19 = vadd.f32 1.0, %v49_v16  ;;  %v92_v20 = vmul.f32 4.5, %v91_v15  ;;  %v53_v25 = vmul.f32 -0.5, %v49_v16  ;;  %v56_v29 = vand.u32 2147483647, %v49_v16 }
  0x24   :  { %v71_v21 = vsel %vm67_vm1, %v69_v17, %v138_v14 }
  0x25   :  { %143 = vlog2.f32 %v50_v19  ;;  %v72_v22 = vadd.f32 1.0, %v71_v21  ;;  %v94_v23 = vsel %vm90_vm2, %v92_v20, %v139_v18  ;;  %v75_v26 = vmul.f32 -0.5, %v71_v21 }
  0x26   :  { %v95_v24 = vadd.f32 1.0, %v94_v23  ;;  %v54_v27 = vadd.f32 1.0, %v53_v25  ;;  %v98_v28 = vmul.f32 -0.5, %v94_v23  ;;  %v78_v31 = vand.u32 2147483647, %v71_v21 }
  0x27   :  { %145 = vlog2.f32 %v72_v22  ;;  %v76_v30 = vadd.f32 1.0, %v75_v26  ;;  %vm57_vm3 = vcmp.lt.f32.partialorder %v56_v29, 0.0004427343  ;;  %v101_v35 = vand.u32 2147483647, %v94_v23 }
  0x28   :  { %147 = vlog2.f32 %v95_v24  ;;  %v55_v32 = vmul.f32 %v54_v27, %v49_v16  ;;  %v99_v33 = vadd.f32 1.0, %v98_v28  ;;  %vm79_vm4 = vcmp.lt.f32.partialorder %v78_v31, 0.0004427343 }
  0x29   :  { %v77_v37 = vmul.f32 %v76_v30, %v71_v21  ;;  %vm102_vm5 = vcmp.lt.f32.partialorder %v101_v35, 0.0004427343 }
  0x2a   :  { %v100_v41 = vmul.f32 %v99_v33, %v94_v23 }
  0x32   :  { %v144_v34 = vpop.eup %143 }
  0x33   :  { %v52_v36 = vmul.f32 0.6931472, %v144_v34 }
  0x34   :  { %v146_v38 = vpop.eup %145 }
  0x35   :  { %v58_v39 = vsel %vm57_vm3, %v55_v32, %v52_v36  ;;  %v74_v40 = vmul.f32 0.6931472, %v146_v38  ;;  %v148_v42 = vpop.eup %147 }
  0x36   :  { %v59_v43 = vrot.slane %v58_v39, 4  ;;  %v97_v45 = vmul.f32 0.6931472, %v148_v42 }
  0x37   :  { %v80_v44 = vsel %vm79_vm4, %v77_v37, %v74_v40 }
  0x38   :  { %v60_v46 = vadd.f32 %v59_v43, %v58_v39  ;;  %v81_v47 = vrot.slane %v80_v44, 4  ;;  %v103_v48 = vsel %vm102_vm5, %v100_v41, %v97_v45 }
  0x39   :  { %v104_v51 = vrot.slane %v103_v48, 4 }
  0x3a   :  { %v61_v49 = vrot.slane %v60_v46, 2  ;;  %v82_v50 = vadd.f32 %v81_v47, %v80_v44 }
  0x3b   :  { %v105_v54 = vadd.f32 %v104_v51, %v103_v48 }
  0x3c   :  { %v62_v52 = vadd.f32 %v61_v49, %v60_v46  ;;  %v83_v53 = vrot.slane %v82_v50, 2 }
  0x3d   :  { %v106_v57 = vrot.slane %v105_v54, 2 }
  0x3e   :  { %v63_v55 = vrot.slane %v62_v52, 1  ;;  %v84_v56 = vadd.f32 %v83_v53, %v82_v50 }
  0x3f   :  { %v107_v61 = vadd.f32 %v106_v57, %v105_v54 }
  0x40   :  { %v64_v59 = vadd.f32 %v63_v55, %v62_v52  ;;  %v85_v60 = vrot.slane %v84_v56, 1 }
  0x41   :  { %v108_v63 = vrot.slane %v107_v61, 1 }
  0x42   :  { %v86_v62 = vadd.f32 %v85_v60, %v84_v56 }
  0x43   :  { %v109_v2 = vadd.f32 %v108_v63, %v107_v61 }
  0x44   :  { %v87_v1 = vmin.f32 %v64_v59, %v86_v62 }
  0x46   :  { %v110_v4 = vmin.f32 %v87_v1, %v109_v2 }
  0x48   :  { %v112_v5 = vmul.f32 %v111_v3, %v110_v4 }
  0x4a   :  { %v119_v6 = vsel %vm118_vm6, %v112_v5, 0.0 }
  0x4b   :  { %120 = vst [vmem:[#allocation7] sm:$0x1] %v119_v6 }
  0x4c   :  { %200 = shalt.err (!%p197_p0)
}
  0x4d   :  { %130 = dma.vmem_to_hbm [thread:$0]  %s128_s23, 16, %s253_s3, [#allocation4]  }
  0x4e   :  { %213 = dma.done.wait [#allocation4], 16  }
  0x4f   :  { %214 = vsyncadd [#allocation4], 4294967280 }
  0x50   :  { %134 = vsyncpa [#allocation3], 1 }
  0x51   :  { %135 = vsyncpa [#allocation6], 1 }
  0x52   :  { %136 = vsyncpa [#allocation4], 1 }

</bundles_post_ra>
